<compile_context>
chip_gen: v7x
topology: tpu7x:2x2x1
jax: 0.10.0
libtpu: 0.0.40
codegen_flags: <defaults>
</compile_context>

<pallas_src>
import jax
import jax.numpy as jnp
from jax.experimental import pallas as pl
from jax.experimental.pallas import tpu as pltpu


def _round_up(x, m):
    return (x + m - 1) // m * m


def _neumf_mlp_kernel(ue_ref, ie_ref, w1u_ref, w1i_ref, b1_ref,
                      w2_ref, b2_ref, wo_ref, bo_ref, out_ref):
    """Fused MLP tower for one (BM, E) batch tile; writes a (1, BM) row."""
    # Layer 1 (concat-free): x @ W1 == ue @ W1[:E] + ie @ W1[E:].
    # bf16 MXU inputs, f32 accumulation.
    h = jnp.dot(ue_ref[...], w1u_ref[...], preferred_element_type=jnp.float32)
    h = h + jnp.dot(ie_ref[...], w1i_ref[...],
                    preferred_element_type=jnp.float32)
    h = jnp.maximum(h + b1_ref[...], 0.0)                     # (BM, H0) f32

    # Layer 2.
    h = jnp.dot(h.astype(w2_ref.dtype), w2_ref[...],
                preferred_element_type=jnp.float32)
    h = jnp.maximum(h + b2_ref[...], 0.0)                     # (BM, H1) f32

    # Output layer Linear(H1 -> 1): VPU multiply + XLU lane reduction instead
    # of a degenerate MXU matmul; the (BM,) result is relaid out to a
    # lane-dense (1, BM) row (XLU has slack) so stores are unmasked.
    o = jnp.sum(h * wo_ref[...], axis=-1)                     # (BM,)
    o = o.reshape(1, o.shape[0])                              # (1, BM)
    out_ref[...] = (o + bo_ref[...]).astype(out_ref.dtype)


def prepare_params(params):
    """One-time conversion of torch-layout f32 params to kernel dtypes."""
    E = params["user_embedding"].shape[1]
    H1 = params["w2"].shape[1]
    return {
        # bf16 tables: jnp.take then emits bf16 rows directly, halving the
        # dominant HBM byte stream feeding the kernel.
        "user_embedding": params["user_embedding"].astype(jnp.bfloat16),
        "item_embedding": params["item_embedding"].astype(jnp.bfloat16),
        "w1u": params["w1"][:E].astype(jnp.bfloat16),            # (E, H0)
        "w1i": params["w1"][E:].astype(jnp.bfloat16),            # (E, H0)
        "b1": params["b1"].astype(jnp.float32),                  # (1, H0)
        "w2": params["w2"].astype(jnp.bfloat16),                 # (H0, H1)
        "b2": params["b2"].astype(jnp.float32),                  # (1, H1)
        "wo": params["w_out"].reshape(1, H1).astype(jnp.float32),  # (1, H1)
        "bo": params["b_out"].reshape(1, 1).astype(jnp.float32),   # (1, 1)
    }


def neumf_forward(user_ids, item_ids, prep, *, block_m=2048):
    """Full forward pass. Embedding gathers in JAX, fused MLP in Pallas."""
    ue = jnp.take(prep["user_embedding"], user_ids, axis=0)   # (B, E) bf16
    ie = jnp.take(prep["item_embedding"], item_ids, axis=0)   # (B, E) bf16
    B, E = ue.shape
    H0 = prep["w1u"].shape[1]
    H1 = prep["w2"].shape[1]

    # Batch tiling: 128-aligned tiles (bf16 sublane pack + lane-dense output).
    block_m = max(128, _round_up(block_m, 128))
    b_aligned = _round_up(B, 128)
    bm = min(block_m, b_aligned)
    # Keep >= 2 grid steps when it costs no extra padding so the "parallel"
    # batch axis can shard across both v7x TensorCores (no-op on v5e/v6e).
    if bm == b_aligned and bm >= 256 and bm % 256 == 0:
        bm //= 2
    b_pad = _round_up(B, bm)
    if b_pad != B:
        ue = jnp.pad(ue, ((0, b_pad - B), (0, 0)))
        ie = jnp.pad(ie, ((0, b_pad - B), (0, 0)))
    grid = (b_pad // bm,)

    def row_spec(shape):      # per-grid-step batch tile
        return pl.BlockSpec(shape, lambda i: (i, 0))

    def res_spec(shape):      # VMEM-resident across the whole grid
        return pl.BlockSpec(shape, lambda i: (0, 0))

    flops = 2 * b_pad * (2 * E * H0 + H0 * H1 + H1)
    bytes_accessed = (2 * b_pad * E * 2          # bf16 embedding tiles in
                      + b_pad * 4                # f32 output row
                      + (2 * E * H0 + H0 * H1) * 2
                      + (H0 + H1 + H1 + 1) * 4)  # biases + w_out + b_out

    out = pl.pallas_call(
        _neumf_mlp_kernel,
        out_shape=jax.ShapeDtypeStruct((1, b_pad), jnp.float32),
        grid_spec=pltpu.PrefetchScalarGridSpec(
            num_scalar_prefetch=0,
            grid=grid,
            in_specs=[
                row_spec((bm, E)),     # user embedding tile
                row_spec((bm, E)),     # item embedding tile
                res_spec((E, H0)),     # w1 (user half)
                res_spec((E, H0)),     # w1 (item half)
                res_spec((1, H0)),     # b1
                res_spec((H0, H1)),    # w2
                res_spec((1, H1)),     # b2
                res_spec((1, H1)),     # w_out as a row
                res_spec((1, 1)),      # b_out
            ],
            out_specs=pl.BlockSpec((1, bm), lambda i: (0, i)),
        ),
        compiler_params=pltpu.CompilerParams(
            dimension_semantics=("parallel",),
            vmem_limit_bytes=32 * 1024 * 1024,
        ),
        cost_estimate=pl.CostEstimate(
            flops=flops, transcendentals=0, bytes_accessed=bytes_accessed),
    )(ue, ie, prep["w1u"], prep["w1i"], prep["b1"],
      prep["w2"], prep["b2"], prep["wo"], prep["bo"])

    # torch's .squeeze() on (B, 1) -> (B,); drop batch padding.
    return out[0, :B]


def init_params(key, num_users, num_items, embedding_dim, hidden_dims):
    """Deterministic parameter init matching the module's shapes (f32)."""
    assert len(hidden_dims) == 2, "this script fixes the MLP depth to 2"
    k = jax.random.split(key, 8)

    def linear(kw, kb, fan_in, fan_out):
        bound = 1.0 / jnp.sqrt(fan_in)
        w = jax.random.uniform(kw, (fan_in, fan_out), jnp.float32, -bound, bound)
        b = jax.random.uniform(kb, (1, fan_out), jnp.float32, -bound, bound)
        return w, b

    w1, b1 = linear(k[2], k[3], embedding_dim * 2, hidden_dims[0])
    w2, b2 = linear(k[4], k[5], hidden_dims[0], hidden_dims[1])
    wo, bo = linear(k[6], k[7], hidden_dims[1], 1)

    return {
        # nn.Embedding default init: N(0, 1)
        "user_embedding": jax.random.normal(k[0], (num_users, embedding_dim),
                                            jnp.float32),
        "item_embedding": jax.random.normal(k[1], (num_items, embedding_dim),
                                            jnp.float32),
        "w1": w1, "b1": b1,
        "w2": w2, "b2": b2,
        "w_out": wo, "b_out": bo,
    }


def _reference(user_ids, item_ids, prep):
    """Pure-JAX reference using the same bf16-input / f32-accumulate recipe."""
    ue = jnp.take(prep["user_embedding"], user_ids, axis=0)
    ie = jnp.take(prep["item_embedding"], item_ids, axis=0)
    h = (jnp.dot(ue, prep["w1u"], preferred_element_type=jnp.float32)
         + jnp.dot(ie, prep["w1i"], preferred_element_type=jnp.float32))
    h = jnp.maximum(h + prep["b1"], 0.0)
    h = jnp.dot(h.astype(jnp.bfloat16), prep["w2"],
                preferred_element_type=jnp.float32)
    h = jnp.maximum(h + prep["b2"], 0.0)
    return jnp.sum(h * prep["wo"], axis=-1) + prep["bo"][0, 0]


if __name__ == "__main__":
    num_users, num_items = 64, 128
    embedding_dim = 32
    hidden_dims = (64, 32)

    key = jax.random.PRNGKey(0)
    kp, ku1, ki1, ku2, ki2 = jax.random.split(key, 5)

    params = init_params(kp, num_users, num_items, embedding_dim, hidden_dims)
    prep = prepare_params(params)

    fwd = jax.jit(neumf_forward)

    # Case 1: tiny batch (single grid step, padded 8 -> 128).
    b1 = 8
    u1 = jax.random.randint(ku1, (b1,), 0, num_users, dtype=jnp.int32)
    i1 = jax.random.randint(ki1, (b1,), 0, num_items, dtype=jnp.int32)
    out1 = fwd(u1, i1, prep)
    jax.block_until_ready(out1)
    assert out1.shape == (b1,), out1.shape
    ref1 = _reference(u1, i1, prep)
    assert jnp.allclose(out1, ref1, atol=1e-3, rtol=1e-3), (out1, ref1)

    # Case 2: batch not a multiple of the tile; exercises pad+slice and a
    # 2-step grid (bm=128, b_pad=256), i.e. the v7x megacore path too.
    b2 = 200
    u2 = jax.random.randint(ku2, (b2,), 0, num_users, dtype=jnp.int32)
    i2 = jax.random.randint(ki2, (b2,), 0, num_items, dtype=jnp.int32)
    out2 = fwd(u2, i2, prep)
    jax.block_until_ready(out2)
    assert out2.shape == (b2,), out2.shape
    ref2 = _reference(u2, i2, prep)
    assert jnp.allclose(out2, ref2, atol=1e-3, rtol=1e-3), (out2, ref2)

    print("KERNEL_OK")
</pallas_src>

<mosaic_0001>
module attributes {stable_mosaic.version = 11 : i64} {
  func.func @_neumf_mlp_kernel(%arg0: i32, %arg1: memref<128x32xbf16, #tpu.memory_space<vmem>>, %arg2: memref<128x32xbf16, #tpu.memory_space<vmem>>, %arg3: memref<32x64xbf16, #tpu.memory_space<vmem>>, %arg4: memref<32x64xbf16, #tpu.memory_space<vmem>>, %arg5: memref<1x64xf32, #tpu.memory_space<vmem>>, %arg6: memref<64x32xbf16, #tpu.memory_space<vmem>>, %arg7: memref<1x32xf32, #tpu.memory_space<vmem>>, %arg8: memref<1x32xf32, #tpu.memory_space<vmem>>, %arg9: memref<1x1xf32, #tpu.memory_space<vmem>>, %arg10: memref<1x128xf32, #tpu.memory_space<vmem>>) attributes {dimension_semantics = [#tpu.dimension_semantics<parallel>], iteration_bounds = array<i64: 1>, scalar_prefetch = 0 : i64, scratch_operands = 0 : i64, tpu.core_type = #tpu.core_type<tc>, window_params = [{transform_indices = @transform_0, window_bounds = array<i64: 128, 32>}, {transform_indices = @transform_1, window_bounds = array<i64: 128, 32>}, {pipeline_mode = #tpu.pipeline_mode<synchronous>, transform_indices = @transform_2, window_bounds = array<i64: 32, 64>}, {pipeline_mode = #tpu.pipeline_mode<synchronous>, transform_indices = @transform_3, window_bounds = array<i64: 32, 64>}, {pipeline_mode = #tpu.pipeline_mode<synchronous>, transform_indices = @transform_4, window_bounds = array<i64: 1, 64>}, {pipeline_mode = #tpu.pipeline_mode<synchronous>, transform_indices = @transform_5, window_bounds = array<i64: 64, 32>}, {pipeline_mode = #tpu.pipeline_mode<synchronous>, transform_indices = @transform_6, window_bounds = array<i64: 1, 32>}, {pipeline_mode = #tpu.pipeline_mode<synchronous>, transform_indices = @transform_7, window_bounds = array<i64: 1, 32>}, {pipeline_mode = #tpu.pipeline_mode<synchronous>, transform_indices = @transform_8, window_bounds = array<i64: 1, 1>}, {transform_indices = @transform_9, window_bounds = array<i64: 1, 128>}]} {
    %c0 = arith.constant 0 : index
    %c0_0 = arith.constant 0 : index
    %0 = vector.load %arg1[%c0, %c0_0] : memref<128x32xbf16, #tpu.memory_space<vmem>>, vector<128x32xbf16>
    %c0_1 = arith.constant 0 : index
    %c0_2 = arith.constant 0 : index
    %1 = vector.load %arg3[%c0_1, %c0_2] : memref<32x64xbf16, #tpu.memory_space<vmem>>, vector<32x64xbf16>
    %cst = arith.constant dense<0.000000e+00> : vector<128x64xf32>
    %2 = tpu.matmul %0, %1, %cst {dimension_numbers = #tpu.dot_dimension_numbers<[1], [0], [0], [1], [0, 0, 1, 1], [], []>} : vector<128x32xbf16>, vector<32x64xbf16>, vector<128x64xf32> -> vector<128x64xf32>
    %c0_3 = arith.constant 0 : index
    %c0_4 = arith.constant 0 : index
    %3 = vector.load %arg2[%c0_3, %c0_4] : memref<128x32xbf16, #tpu.memory_space<vmem>>, vector<128x32xbf16>
    %c0_5 = arith.constant 0 : index
    %c0_6 = arith.constant 0 : index
    %4 = vector.load %arg4[%c0_5, %c0_6] : memref<32x64xbf16, #tpu.memory_space<vmem>>, vector<32x64xbf16>
    %cst_7 = arith.constant dense<0.000000e+00> : vector<128x64xf32>
    %5 = tpu.matmul %3, %4, %cst_7 {dimension_numbers = #tpu.dot_dimension_numbers<[1], [0], [0], [1], [0, 0, 1, 1], [], []>} : vector<128x32xbf16>, vector<32x64xbf16>, vector<128x64xf32> -> vector<128x64xf32>
    %6 = arith.addf %2, %5 : vector<128x64xf32>
    %c0_8 = arith.constant 0 : index
    %c0_9 = arith.constant 0 : index
    %7 = vector.load %arg5[%c0_8, %c0_9] : memref<1x64xf32, #tpu.memory_space<vmem>>, vector<1x64xf32>
    %8 = vector.broadcast %7 : vector<1x64xf32> to vector<128x64xf32>
    %9 = arith.addf %6, %8 : vector<128x64xf32>
    %cst_10 = arith.constant 0.000000e+00 : f32
    %10 = vector.broadcast %cst_10 : f32 to vector<128x64xf32>
    %11 = arith.maximumf %9, %10 : vector<128x64xf32>
    %12 = arith.truncf %11 : vector<128x64xf32> to vector<128x64xbf16>
    %c0_11 = arith.constant 0 : index
    %c0_12 = arith.constant 0 : index
    %13 = vector.load %arg6[%c0_11, %c0_12] : memref<64x32xbf16, #tpu.memory_space<vmem>>, vector<64x32xbf16>
    %cst_13 = arith.constant dense<0.000000e+00> : vector<128x32xf32>
    %14 = tpu.matmul %12, %13, %cst_13 {dimension_numbers = #tpu.dot_dimension_numbers<[1], [0], [0], [1], [0, 0, 1, 1], [], []>} : vector<128x64xbf16>, vector<64x32xbf16>, vector<128x32xf32> -> vector<128x32xf32>
    %c0_14 = arith.constant 0 : index
    %c0_15 = arith.constant 0 : index
    %15 = vector.load %arg7[%c0_14, %c0_15] : memref<1x32xf32, #tpu.memory_space<vmem>>, vector<1x32xf32>
    %16 = vector.broadcast %15 : vector<1x32xf32> to vector<128x32xf32>
    %17 = arith.addf %14, %16 : vector<128x32xf32>
    %cst_16 = arith.constant 0.000000e+00 : f32
    %18 = vector.broadcast %cst_16 : f32 to vector<128x32xf32>
    %19 = arith.maximumf %17, %18 : vector<128x32xf32>
    %c0_17 = arith.constant 0 : index
    %c0_18 = arith.constant 0 : index
    %20 = vector.load %arg8[%c0_17, %c0_18] : memref<1x32xf32, #tpu.memory_space<vmem>>, vector<1x32xf32>
    %21 = vector.broadcast %20 : vector<1x32xf32> to vector<128x32xf32>
    %22 = arith.mulf %19, %21 : vector<128x32xf32>
    %cst_19 = arith.constant dense<0.000000e+00> : vector<128xf32>
    %23 = vector.multi_reduction <add>, %22, %cst_19 [1] : vector<128x32xf32> to vector<128xf32>
    %24 = vector.shape_cast %23 : vector<128xf32> to vector<1x128xf32>
    %c0_20 = arith.constant 0 : index
    %c0_21 = arith.constant 0 : index
    %25 = vector.load %arg9[%c0_20, %c0_21] : memref<1x1xf32, #tpu.memory_space<vmem>>, vector<1x1xf32>
    %26 = vector.broadcast %25 : vector<1x1xf32> to vector<1x128xf32>
    %27 = arith.addf %24, %26 : vector<1x128xf32>
    %c0_22 = arith.constant 0 : index
    %c0_23 = arith.constant 0 : index
    %28 = vector.load %arg10[%c0_22, %c0_23] : memref<1x128xf32, #tpu.memory_space<vmem>>, vector<1x128xf32>
    tpu.vector_store %arg10[%c0_22, %c0_23], %27 {strides = array<i32>} : memref<1x128xf32, #tpu.memory_space<vmem>>, vector<1x128xf32>,
    return
  }
  func.func @transform_0(%arg0: i32) -> (i32, i32) {
    %c0_i32 = arith.constant 0 : i32
    %c0_i32_0 = arith.constant 0 : i32
    return %arg0, %c0_i32 : i32, i32
  }
  func.func @transform_1(%arg0: i32) -> (i32, i32) {
    %c0_i32 = arith.constant 0 : i32
    %c0_i32_0 = arith.constant 0 : i32
    return %arg0, %c0_i32 : i32, i32
  }
  func.func @transform_2(%arg0: i32) -> (i32, i32) {
    %c0_i32 = arith.constant 0 : i32
    %c0_i32_0 = arith.constant 0 : i32
    %c0_i32_1 = arith.constant 0 : i32
    return %c0_i32, %c0_i32_0 : i32, i32
  }
  func.func @transform_3(%arg0: i32) -> (i32, i32) {
    %c0_i32 = arith.constant 0 : i32
    %c0_i32_0 = arith.constant 0 : i32
    %c0_i32_1 = arith.constant 0 : i32
    return %c0_i32, %c0_i32_0 : i32, i32
  }
  func.func @transform_4(%arg0: i32) -> (i32, i32) {
    %c0_i32 = arith.constant 0 : i32
    %c0_i32_0 = arith.constant 0 : i32
    %c0_i32_1 = arith.constant 0 : i32
    return %c0_i32, %c0_i32_0 : i32, i32
  }
  func.func @transform_5(%arg0: i32) -> (i32, i32) {
    %c0_i32 = arith.constant 0 : i32
    %c0_i32_0 = arith.constant 0 : i32
    %c0_i32_1 = arith.constant 0 : i32
    return %c0_i32, %c0_i32_0 : i32, i32
  }
  func.func @transform_6(%arg0: i32) -> (i32, i32) {
    %c0_i32 = arith.constant 0 : i32
    %c0_i32_0 = arith.constant 0 : i32
    %c0_i32_1 = arith.constant 0 : i32
    return %c0_i32, %c0_i32_0 : i32, i32
  }
  func.func @transform_7(%arg0: i32) -> (i32, i32) {
    %c0_i32 = arith.constant 0 : i32
    %c0_i32_0 = arith.constant 0 : i32
    %c0_i32_1 = arith.constant 0 : i32
    return %c0_i32, %c0_i32_0 : i32, i32
  }
  func.func @transform_8(%arg0: i32) -> (i32, i32) {
    %c0_i32 = arith.constant 0 : i32
    %c0_i32_0 = arith.constant 0 : i32
    %c0_i32_1 = arith.constant 0 : i32
    return %c0_i32, %c0_i32_0 : i32, i32
  }
  func.func @transform_9(%arg0: i32) -> (i32, i32) {
    %c0_i32 = arith.constant 0 : i32
    %c0_i32_0 = arith.constant 0 : i32
    return %c0_i32, %arg0 : i32, i32
  }
}

</mosaic_0001>

<bundles_post_ra>
// kernel: neumf_forward.1
= control target key start
LH: loop header
LB: loop body
LE: loop exit
PB: predicated region body
PF: predicated region fallthrough
CT: control target
= control target key end

     0   :  { %vm127_vm0 = vcmask 261120   ;;  %vm508_vm1 = vcmask 523264   ;;  %vm770_vm2 = vcmask 130112   ;;  %vm777_vm3 = vcmask 195712   ;;  %s1361_s3 = inlined_call_operand.vmem [shape: bf16[32,64], index: 3, kind: input, shape index: {}]   ;;  %s1362_s1 = inlined_call_operand.vmem [shape: bf16[128,32], index: 1, kind: input, shape index: {}]   ;;  %s1363_s2 = inlined_call_operand.vmem [shape: bf16[32,64], index: 2, kind: input, shape index: {}]   ;;  %s1364_s0 = inlined_call_operand.vmem [shape: bf16[128,32], index: 0, kind: input, shape index: {}]   ;;  %s1365_s5 = inlined_call_operand.vmem [shape: bf16[64,32], index: 5, kind: input, shape index: {}]   ;;  %s1366_s4 = inlined_call_operand.vmem [shape: f32[1,64], index: 4, kind: input, shape index: {}]   ;;  %s1367_s8 = inlined_call_operand.<no memory space> [shape: f32[1,1], index: 8, kind: input, shape index: {}]   ;;  %s1368_s6 = inlined_call_operand.vmem [shape: f32[1,32], index: 6, kind: input, shape index: {}]   ;;  %s1369_s7 = inlined_call_operand.vmem [shape: f32[1,32], index: 7, kind: input, shape index: {}]   ;;  %s1370_s9 = inlined_call_operand.vmem [shape: f32[1,128], index: 9, kind: output, shape index: {}]  }
   0x1   :  { %v1046_v0 = vld [vmem:[%s1361_s3] sm:$0xff]   ;;  %v1047_v1 = vld [vmem:[%s1361_s3 + $0x8] sm:$0xff]   ;;  %v1051_v5 = vld [vmem:[%s1362_s1 + $0x10] sm:$0xff]   ;;  %vm784_vm4 = vcmask 261312   ;;  %vm791_vm5 = vcmask 326912   ;;  %vm798_vm6 = vcmask 392512  }
   0x2   :  { %959 = vmatprep.subr.bf16.mxu0 %v1046_v0  ;;  %v1048_v2 = vld [vmem:[%s1362_s1] sm:$0xff]   ;;  %1023 = vmatprep.subr.bf16.mxu1 %v1046_v0  ;;  %v1049_v4 = vld [vmem:[%s1362_s1 + $0x8] sm:$0xff]   ;;  %v1052_v8 = vld [vmem:[%s1362_s1 + $0x18] sm:$0xff]   ;;  %vm805_vm7 = vcmask 458112   ;;  %vm812_vm8 = vcmask 523712   ;;  %vm819_vm9 = vcmask 589312  }
   0x3   :  { %960 = vmatpush3.bf16.msra.mxu0 %v1046_v0  ;;  %1025 = vmatpush3.bf16.msra.mxu1 %v1046_v0  ;;  %v1050_v3 = vld [vmem:[%s1363_s2] sm:$0xff]   ;;  %v1053_v6 = vld [vmem:[%s1363_s2 + $0x8] sm:$0xff]   ;;  %v1062_v11 = vld [vmem:[%s1362_s1 + $0x30] sm:$0xff]   ;;  %vm826_vm10 = vcmask 654912   ;;  %vm833_vm11 = vcmask 720512   ;;  %vm840_vm12 = vcmask 786112  }
   0x4   :  { %961 = vmatprep.subr.bf16.mxu0 %v1047_v1  ;;  %963 = vmatprep.mubr.msk.bf16.mxu0 %vm127_vm0, %v1048_v2  ;;  %v1058_v7 = vld [vmem:[%s1362_s1 + $0x20] sm:$0xff]   ;;  %v1060_v9 = vld [vmem:[%s1362_s1 + $0x28] sm:$0xff]   ;;  %v1064_v12 = vld [vmem:[%s1362_s1 + $0x38] sm:$0xff]   ;;  %vm847_vm13 = vcmask 851712   ;;  %vm854_vm14 = vcmask 917312   ;;  %vm861_vm15 = vcmask 982912  }
   0x5   :  { %1024 = vmatprep.subr.bf16.mxu1 %v1047_v1  ;;  %971 = vmatprep.mubr.msk.bf16.mxu1 %vm127_vm0, %v1058_v7  ;;  %v1054_v10 = vld [vmem:[%s1364_s0] sm:$0xff]   ;;  %v1055_v13 = vld [vmem:[%s1364_s0 + $0x8] sm:$0xff]   ;;  %v1056_v16 = vld [vmem:[%s1364_s0 + $0x10] sm:$0xff]  }
   0x6   :  { %v1066_v14 = vld [vmem:[%s1365_s5] sm:$0xff]   ;;  %v1067_v15 = vld [vmem:[%s1365_s5 + $0x8] sm:$0xff]   ;;  %v1057_v17 = vld [vmem:[%s1364_s0 + $0x18] sm:$0xff]  }
   0x7   :  { %962 = vmatpush3.bf16.msra.mxu0 %v1047_v1  ;;  %1026 = vmatpush3.bf16.msra.mxu1 %v1047_v1  ;;  %v1059_v18 = vld [vmem:[%s1364_s0 + $0x20] sm:$0xff]   ;;  %v1061_v19 = vld [vmem:[%s1364_s0 + $0x28] sm:$0xff]   ;;  %v1063_v20 = vld [vmem:[%s1364_s0 + $0x30] sm:$0xff]  }
   0x8   :  { %979 = vmatprep.subr.bf16.mxu0 %v1050_v3  ;;  %999 = vmatprep.subr.bf16.mxu1 %v1066_v14  ;;  %v1065_v21 = vld [vmem:[%s1364_s0 + $0x38] sm:$0xff]   ;;  %v1068_v22 = vld [vmem:[%s1365_s5 + $0x10] sm:$0xff]   ;;  %v1212_v28 = vld [vmem:[%s1366_s4] ss:$0 sm:$0xff] }
   0x9   :  { %v1069_v23 = vld [vmem:[%s1365_s5 + $0x18] sm:$0xff]  }
   0xa   :  { %964 = vmatmul.mubr.msk.bf16.vlgmr.msra.gmra.mrb[0].mxu0 %vm127_vm0, %v1049_v4  ;;  %972 = vmatmul.mubr.msk.bf16.vlgmr.msra.gmra.mrb[0].mxu1 %vm127_vm0, %v1060_v9 }
   0xb   :  { %980 = vmatpush3.bf16.msra.mxu0 %v1050_v3  ;;  %967 = vmatprep.mubr.msk.bf16.mxu0 %vm127_vm0, %v1051_v5 }
   0xc   :  { %981 = vmatprep.subr.bf16.mxu0 %v1053_v6  ;;  %975 = vmatprep.mubr.msk.bf16.mxu1 %vm127_vm0, %v1062_v11 }
   0xd   :  { %1000 = vmatpush3.bf16.msra.mxu1 %v1066_v14 }
   0xe   :  { %1001 = vmatprep.subr.bf16.mxu1 %v1067_v15 }
   0xf   :  { %982 = vmatpush3.bf16.msra.mxu0 %v1053_v6 }
  0x11   :  { %1002 = vmatpush3.bf16.msra.mxu1 %v1067_v15 }
  0x12   :  { %968 = vmatmul.mubr.msk.bf16.gmra.mrb[4].mxu0 %vm127_vm0, %v1052_v8  ;;  %976 = vmatmul.mubr.msk.bf16.gmra.mrb[4].mxu1 %vm127_vm0, %v1064_v12 }
  0x13   :  { %983 = vmatprep.mubr.msk.bf16.mxu0 %vm127_vm0, %v1054_v10  ;;  %1003 = vmatprep.subr.bf16.mxu1 %v1068_v22 }
  0x15   :  { %1004 = vmatpush3.bf16.msra.mxu1 %v1068_v22 }
  0x16   :  { %1005 = vmatprep.subr.bf16.mxu1 %v1069_v23 }
  0x19   :  { %1006 = vmatpush3.bf16.msra.mxu1 %v1069_v23 }
  0x1a   :  { %984 = vmatmul.mubr.msk.bf16.vlgmr.msra.gmra.mrb[0].mxu0 %vm127_vm0, %v1055_v13 }
  0x1b   :  { %987 = vmatprep.mubr.msk.bf16.mxu0 %vm127_vm0, %v1056_v16 }
  0x22   :  { %988 = vmatmul.mubr.msk.bf16.gmra.mrb[4].mxu0 %vm127_vm0, %v1057_v17 }
  0x23   :  { %991 = vmatprep.mubr.msk.bf16.mxu0 %vm127_vm0, %v1059_v18 }
  0x2a   :  { %992 = vmatmul.mubr.msk.bf16.gmra.mrb[8].mxu0 %vm127_vm0, %v1061_v19 }
  0x2b   :  { %995 = vmatprep.mubr.msk.bf16.mxu0 %vm127_vm0, %v1063_v20 }
  0x32   :  { %996 = vmatmul.mubr.msk.bf16.gmra.mrb[12].mxu0 %vm127_vm0, %v1065_v21 }
  0xdd   :  { %v973_v24 = vpop.f32.mrb[0].mxu1 }
  0xde   :  { %v218_v25 = vpop.f32.mrb[1].mxu1 }
  0xdf   :  { %v974_v26 = vpop.f32.mrb[2].mxu1 }
  0xe0   :  { %v221_v27 = vpop.f32.mrb[3].mxu1 }
  0xe5   :  { %v977_v29 = vpop.f32.mrb[4].mxu1 }
  0xe6   :  { %v234_v30 = vpop.f32.mrb[5].mxu1 }
  0xe7   :  { %v978_v32 = vpop.f32.mrb[6].mxu1 }
  0xe8   :  { %v237_v35 = vpop.f32.mrb[7].mxu1 }
  0xed   :  { %v985_v31 = vpop.f32.mrb[0].mxu0 }
  0xee   :  { %v431_v33 = vadd.f32 %v985_v31, %v1212_v28  ;;  %v359_v34 = vpop.f32.mrb[1].mxu0 }
  0xef   :  { %v429_v36 = vadd.f32 %v1212_v28, %v359_v34  ;;  %v986_v37 = vpop.f32.mrb[2].mxu0 }
  0xf0   :  { %v432_v38 = vadd.f32 %v986_v37, %v1212_v28  ;;  %v362_v39 = vpop.f32.mrb[3].mxu0  ;;  %v447_v41 = vmax.f32 %v431_v33, 0.0 }
  0xf1   :  { %v430_v40 = vadd.f32 %v1212_v28, %v362_v39  ;;  %v445_v43 = vmax.f32 %v429_v36, 0.0 }
  0xf2   :  { %v448_v42 = vmax.f32 %v432_v38, 0.0 }
  0xf3   :  { %v446_v44 = vmax.f32 %v430_v40, 0.0 }
  0xf4   :  { %v462_v45 = vpack.c.bf16 %v448_v42, %v447_v41  ;;  %v1251_v41 = vld [vmem:[%s1369_s7] ss:$0 sm:$0xff] }
  0xf5   :  { %v461_v46 = vpack.c.bf16 %v446_v44, %v445_v43  ;;  %v989_v47 = vpop.f32.mrb[4].mxu0 }
  0xf6   :  { %v435_v48 = vadd.f32 %v989_v47, %v1212_v28  ;;  %v375_v49 = vpop.f32.mrb[5].mxu0 }
  0xf7   :  { %v433_v50 = vadd.f32 %v1212_v28, %v375_v49  ;;  %v990_v51 = vpop.f32.mrb[6].mxu0  ;;  %1007 = vmatprep.mubr.msk.bf16.mxu1 %vm508_vm1, %v461_v46 }
  0xf8   :  { %v436_v52 = vadd.f32 %v990_v51, %v1212_v28  ;;  %v378_v53 = vpop.f32.mrb[7].mxu0  ;;  %1008 = vmatmul.mubr.msk.bf16.vlgmr.msra.gmra.mrb[8].mxu1 %vm508_vm1, %v462_v45  ;;  %v451_v55 = vmax.f32 %v435_v48, 0.0 }
  0xf9   :  { %v434_v54 = vadd.f32 %v1212_v28, %v378_v53  ;;  %v449_v57 = vmax.f32 %v433_v50, 0.0 }
  0xfa   :  { %v452_v56 = vmax.f32 %v436_v52, 0.0 }
  0xfb   :  { %v450_v58 = vmax.f32 %v434_v54, 0.0 }
  0xfc   :  { %v464_v59 = vpack.c.bf16 %v452_v56, %v451_v55 }
  0xfd   :  { %v463_v60 = vpack.c.bf16 %v450_v58, %v449_v57  ;;  %v993_v61 = vpop.f32.mrb[8].mxu0 }
  0xfe   :  { %v400_v62 = vadd.f32 %v993_v61, %v973_v24  ;;  %v391_v63 = vpop.f32.mrb[9].mxu0 }
  0xff   :  { %1011 = vmatprep.mubr.msk.bf16.mxu1 %vm508_vm1, %v463_v60  ;;  %v392_v0 = vadd.f32 %v391_v63, %v218_v25  ;;  %v994_v1 = vpop.f32.mrb[10].mxu0 }
 0x100   :  { %v439_v2 = vadd.f32 %v1212_v28, %v400_v62  ;;  %1012 = vmatmul.mubr.msk.bf16.gmra.mrb[12].mxu1 %vm508_vm1, %v464_v59  ;;  %v403_v3 = vadd.f32 %v994_v1, %v974_v26  ;;  %v394_v4 = vpop.f32.mrb[11].mxu0 }
 0x101   :  { %v437_v5 = vadd.f32 %v1212_v28, %v392_v0  ;;  %v395_v6 = vadd.f32 %v394_v4, %v221_v27 }
 0x102   :  { %v455_v7 = vmax.f32 %v439_v2, 0.0  ;;  %v440_v8 = vadd.f32 %v1212_v28, %v403_v3 }
 0x103   :  { %v453_v9 = vmax.f32 %v437_v5, 0.0  ;;  %v438_v10 = vadd.f32 %v1212_v28, %v395_v6 }
 0x104   :  { %v456_v11 = vmax.f32 %v440_v8, 0.0 }
 0x105   :  { %v454_v12 = vmax.f32 %v438_v10, 0.0  ;;  %v997_v13 = vpop.f32.mrb[12].mxu0 }
 0x106   :  { %v466_v14 = vpack.c.bf16 %v456_v11, %v455_v7  ;;  %v416_v15 = vadd.f32 %v997_v13, %v977_v29  ;;  %v407_v16 = vpop.f32.mrb[13].mxu0 }
 0x107   :  { %v465_v17 = vpack.c.bf16 %v454_v12, %v453_v9  ;;  %v408_v18 = vadd.f32 %v407_v16, %v234_v30  ;;  %v998_v19 = vpop.f32.mrb[14].mxu0 }
 0x108   :  { %v443_v20 = vadd.f32 %v1212_v28, %v416_v15  ;;  %v419_v21 = vadd.f32 %v998_v19, %v978_v32  ;;  %v410_v22 = vpop.f32.mrb[15].mxu0  ;;  %v14_v32 = vstv %s1367_s8 }
 0x109   :  { %1015 = vmatprep.mubr.msk.bf16.mxu1 %vm508_vm1, %v465_v17  ;;  %v441_v23 = vadd.f32 %v1212_v28, %v408_v18  ;;  %v411_v24 = vadd.f32 %v410_v22, %v237_v35  ;;  %15 = vst [vmem:[#allocation2] sm:$0x1] %v14_v32  ;;  %v1070_v35 = vmov 0  }
 0x10a   :  { %v459_v25 = vmax.f32 %v443_v20, 0.0  ;;  %1016 = vmatmul.mubr.msk.bf16.gmra.mrb[16].mxu1 %vm508_vm1, %v466_v14  ;;  %v444_v26 = vadd.f32 %v1212_v28, %v419_v21  ;;  %1044 = vset.pattern.permute.xlu1 %v1070_v35 }
 0x10b   :  { %v457_v27 = vmax.f32 %v441_v23, 0.0  ;;  %v442_v29 = vadd.f32 %v1212_v28, %v411_v24  ;;  %1045 = vset.pattern.permute.xlu0 %v1070_v35  ;;  %v1244_v28 = vld [vmem:[%s1368_s6] ss:$0 sm:$0xff] }
 0x10c   :  { %v460_v31 = vmax.f32 %v444_v26, 0.0 }
 0x10d   :  { %v458_v30 = vmax.f32 %v442_v29, 0.0 }
 0x10e   :  { %v468_v33 = vpack.c.bf16 %v460_v31, %v459_v25 }
 0x10f   :  { %v467_v34 = vpack.c.bf16 %v458_v30, %v457_v27 }
 0x111   :  { %1019 = vmatprep.mubr.msk.bf16.mxu1 %vm508_vm1, %v467_v34 }
 0x112   :  { %1020 = vmatmul.mubr.msk.bf16.gmra.mrb[20].mxu1 %vm508_vm1, %v468_v33 }
 0x1cb   :  { %v1009_v36 = vpop.f32.mrb[8].mxu1 }
 0x1cc   :  { %v576_v37 = vadd.f32 %v1009_v36, %v1244_v28  ;;  %v567_v38 = vpop.f32.mrb[9].mxu1 }
 0x1cd   :  { %v568_v39 = vadd.f32 %v1244_v28, %v567_v38  ;;  %v1010_v40 = vpop.f32.mrb[10].mxu1 }
 0x1ce   :  { %v632_v42 = vmax.f32 %v576_v37, 0.0  ;;  %v579_v43 = vadd.f32 %v1010_v40, %v1244_v28  ;;  %v570_v44 = vpop.f32.mrb[11].mxu1 }
 0x1cf   :  { %v630_v45 = vmax.f32 %v568_v39, 0.0  ;;  %v571_v46 = vadd.f32 %v1244_v28, %v570_v44  ;;  %v717_v39 = vld [vmem:[#allocation2] sm:$0x1] }
 0x1d0   :  { %v633_v47 = vmax.f32 %v579_v43, 0.0  ;;  %v655_v48 = vmul.f32 %v1251_v41, %v632_v42 }
 0x1d1   :  { %v631_v49 = vmax.f32 %v571_v46, 0.0  ;;  %v653_v50 = vmul.f32 %v1251_v41, %v630_v45 }
 0x1d2   :  { %v675_v51 = vsel %vm127_vm0, %v655_v48, 0.0  ;;  %v656_v52 = vmul.f32 %v1251_v41, %v633_v47 }
 0x1d3   :  { %676 = vadd.xlane.f32.xlu1 %v675_v51  ;;  %v1013_v53 = vpop.f32.mrb[12].mxu1  ;;  %v669_v54 = vsel %vm127_vm0, %v653_v50, 0.0  ;;  %v654_v55 = vmul.f32 %v1251_v41, %v631_v49 }
 0x1d4   :  { %v592_v56 = vadd.f32 %v1013_v53, %v1244_v28  ;;  %670 = vadd.xlane.f32.xlu0 %v669_v54  ;;  %v583_v57 = vpop.f32.mrb[13].mxu1  ;;  %v678_v62 = vsel %vm127_vm0, %v656_v52, 0.0 }
 0x1d5   :  { %v584_v58 = vadd.f32 %v1244_v28, %v583_v57  ;;  %v1014_v59 = vpop.f32.mrb[14].mxu1  ;;  %v672_v2 = vsel %vm127_vm0, %v654_v55, 0.0 }
 0x1d6   :  { %v636_v60 = vmax.f32 %v592_v56, 0.0  ;;  %v586_v61 = vpop.f32.mrb[15].mxu1  ;;  %v595_v0 = vadd.f32 %v1014_v59, %v1244_v28 }
 0x1d7   :  { %v634_v63 = vmax.f32 %v584_v58, 0.0  ;;  %v587_v1 = vadd.f32 %v1244_v28, %v586_v61  ;;  %679 = vadd.xlane.f32.xlu1 %v678_v62  ;;  %v723_v61 = vlaneseq }
 0x1d8   :  { %673 = vadd.xlane.f32.xlu0 %v672_v2  ;;  %v659_v3 = vmul.f32 %v1251_v41, %v636_v60  ;;  %v637_v6 = vmax.f32 %v595_v0, 0.0 }
 0x1d9   :  { %v635_v4 = vmax.f32 %v587_v1, 0.0  ;;  %v657_v8 = vmul.f32 %v1251_v41, %v634_v63  ;;  %v1299_v0 = vshrl.u32 %v723_v61, 7  ;;  %v1302_v1 = vand.u32 127, %v723_v61 }
 0x1da   :  { %v687_v5 = vsel %vm127_vm0, %v659_v3, 0.0  ;;  %v660_v14 = vmul.f32 %v1251_v41, %v637_v6 }
 0x1db   :  { %v658_v7 = vmul.f32 %v1251_v41, %v635_v4  ;;  %v681_v13 = vsel %vm127_vm0, %v657_v8, 0.0  ;;  %v772_v6 = vadd.s32 4294967280, %v1302_v1 }
 0x1dc   :  { %688 = vadd.xlane.f32.xlu0 %v687_v5  ;;  %v690_v24 = vsel %vm127_vm0, %v660_v14, 0.0  ;;  %v765_v5 = vadd.s32 4294967288, %v1302_v1 }
 0x1dd   :  { %v684_v9 = vsel %vm127_vm0, %v658_v7, 0.0  ;;  %v1017_v10 = vpop.f32.mrb[16].mxu1 }
 0x1de   :  { %685 = vadd.xlane.f32.xlu1 %v684_v9  ;;  %v608_v11 = vadd.f32 %v1017_v10, %v1244_v28  ;;  %v599_v12 = vpop.f32.mrb[17].mxu1  ;;  %v763_v10 = vsub.s32 %v1302_v1, %v1299_v0 }
 0x1df   :  { %v600_v15 = vadd.f32 %v1244_v28, %v599_v12  ;;  %v1018_v16 = vpop.f32.mrb[18].mxu1 }
 0x1e0   :  { %682 = vadd.xlane.f32.xlu0 %v681_v13  ;;  %v640_v17 = vmax.f32 %v608_v11, 0.0  ;;  %v611_v18 = vadd.f32 %v1018_v16, %v1244_v28  ;;  %v602_v19 = vpop.f32.mrb[19].mxu1  ;;  %v768_v11 = vsub.s32 %v765_v5, %v1299_v0  ;;  %v775_v13 = vsub.s32 %v772_v6, %v1299_v0 }
 0x1e1   :  { %v638_v20 = vmax.f32 %v600_v15, 0.0  ;;  %v603_v21 = vadd.f32 %v1244_v28, %v602_v19  ;;  %v779_v16 = vadd.s32 4294967272, %v1302_v1  ;;  %v786_v19 = vadd.s32 4294967264, %v1302_v1 }
 0x1e2   :  { %v641_v22 = vmax.f32 %v611_v18, 0.0  ;;  %v663_v23 = vmul.f32 %v1251_v41, %v640_v17 }
 0x1e3   :  { %v639_v27 = vmax.f32 %v603_v21, 0.0  ;;  %v661_v31 = vmul.f32 %v1251_v41, %v638_v20 }
 0x1e4   :  { %691 = vadd.xlane.f32.xlu0 %v690_v24  ;;  %v664_v25 = vmul.f32 %v1251_v41, %v641_v22  ;;  %v699_v26 = vsel %vm127_vm0, %v663_v23, 0.0  ;;  %v782_v22 = vsub.s32 %v779_v16, %v1299_v0  ;;  %v793_v23 = vadd.s32 4294967256, %v1302_v1 }
 0x1e5   :  { %v1021_v29 = vpop.f32.mrb[20].mxu1  ;;  %v693_v36 = vsel %vm127_vm0, %v661_v31, 0.0  ;;  %v662_v38 = vmul.f32 %v1251_v41, %v639_v27  ;;  %v800_v31 = vadd.s32 4294967248, %v1302_v1 }
 0x1e6   :  { %v624_v30 = vadd.f32 %v1021_v29, %v1244_v28  ;;  %v615_v33 = vpop.f32.mrb[21].mxu1 }
 0x1e7   :  { %v1022_v34 = vpop.f32.mrb[22].mxu1  ;;  %v616_v37 = vadd.f32 %v1244_v28, %v615_v33  ;;  %v696_v42 = vsel %vm127_vm0, %v662_v38, 0.0 }
 0x1e8   :  { %700 = vadd.xlane.f32.xlu0 %v699_v26  ;;  %v618_v32 = vpop.f32.mrb[23].mxu1  ;;  %v644_v35 = vmax.f32 %v624_v30, 0.0  ;;  %v627_v45 = vadd.f32 %v1022_v34, %v1244_v28  ;;  %v789_v26 = vsub.s32 %v786_v19, %v1299_v0  ;;  %v796_v34 = vsub.s32 %v793_v23, %v1299_v0 }
 0x1e9   :  { %v642_v40 = vmax.f32 %v616_v37, 0.0  ;;  %v619_v43 = vadd.f32 %v1244_v28, %v618_v32  ;;  %v702_v28 = vsel %vm127_vm0, %v664_v25, 0.0 }
 0x1ea   :  { %v667_v44 = vmul.f32 %v1251_v41, %v644_v35  ;;  %v645_v49 = vmax.f32 %v627_v45, 0.0  ;;  %v803_v35 = vsub.s32 %v800_v31, %v1299_v0 }
 0x1eb   :  { %v643_v46 = vmax.f32 %v619_v43, 0.0  ;;  %v665_v48 = vmul.f32 %v1251_v41, %v642_v40  ;;  %v821_v43 = vadd.s32 4294967224, %v1302_v1 }
 0x1ec   :  { %694 = vadd.xlane.f32.xlu0 %v693_v36  ;;  %v711_v47 = vsel %vm127_vm0, %v667_v44, 0.0  ;;  %v668_v53 = vmul.f32 %v1251_v41, %v645_v49  ;;  %v807_v36 = vadd.s32 4294967240, %v1302_v1 }
 0x1ed   :  { %v705_v50 = vsel %vm127_vm0, %v665_v48, 0.0  ;;  %v666_v51 = vmul.f32 %v1251_v41, %v643_v46  ;;  %v725_v41 = vsub.s32 0, %v1299_v0 }
 0x1ee   :  { %v714_v54 = vsel %vm127_vm0, %v668_v53, 0.0  ;;  %v810_v45 = vsub.s32 %v807_v36, %v1299_v0  ;;  %v828_v53 = vadd.s32 4294967216, %v1302_v1 }
 0x1ef   :  { %720 = vperm.xlu1 %1044, %v717_v39   ;;  %v708_v52 = vsel %vm127_vm0, %v666_v51, 0.0  ;;  %v814_v39 = vadd.s32 4294967232, %v1302_v1  ;;  %vm868_vm0 = vcmask 1048512  }
 0x1f0   :  { %697 = vadd.xlane.f32.xlu0 %v696_v42  ;;  %v831_v61 = vsub.s32 %v828_v53, %v1299_v0 }
 0x1f1   :  { %v817_v48 = vsub.s32 %v814_v39, %v1299_v0 }
 0x1f4   :  { %712 = vadd.xlane.f32.xlu0 %v711_v47 }
 0x1f8   :  { %706 = vadd.xlane.f32.xlu0 %v705_v50  ;;  %v824_v50 = vsub.s32 %v821_v43, %v1299_v0 }
 0x1fc   :  { %709 = vadd.xlane.f32.xlu0 %v708_v52 }
 0x200   :  { %715 = vadd.xlane.f32.xlu0 %v714_v54 }
 0x213   :  { %703 = vadd.xlane.f32.xlu1 %v702_v28 }
 0x260   :  { %v677_v58 = vpop.xlane.xlu1 %676 }
 0x261   :  { %v671_v55 = vpop.xlane.xlu0 %670 }
 0x264   :  { %v680_v60 = vpop.xlane.xlu1 %679 }
 0x265   :  { %v674_v56 = vpop.xlane.xlu0 %673 }
 0x269   :  { %v689_v57 = vpop.xlane.xlu0 %688 }
 0x26b   :  { %v686_v62 = vpop.xlane.xlu1 %685 }
 0x26d   :  { %v683_v59 = vpop.xlane.xlu0 %682 }
 0x26f   :  { %v721_v2 = vpop.permute.xlu1 %720 }
 0x270   :  { %v1306_v4 = vrot.slane %v721_v2, %v725_v41  ;;  %v863_v41 = vadd.s32 4294967176, %v1302_v1 }
 0x271   :  { %v692_v63 = vpop.xlane.xlu0 %691 }
 0x272   :  { %v727_v8 = vadd.f32 %v1306_v4, %v671_v55  ;;  %v728_v9 = vadd.f32 %v1306_v4, %v674_v56  ;;  %v729_v12 = vadd.f32 %v1306_v4, %v677_v58  ;;  %v730_v20 = vadd.f32 %v1306_v4, %v680_v60 }
 0x273   :  { %v731_v24 = vadd.f32 %v1306_v4, %v683_v59  ;;  %v732_v30 = vadd.f32 %v1306_v4, %v686_v62  ;;  %v733_v37 = vadd.f32 %v1306_v4, %v689_v57  ;;  %v734_v46 = vadd.f32 %v1306_v4, %v692_v63 }
 0x274   :  { %v764_v14 = vrot.slane %v727_v8, %v763_v10  ;;  %v769_v15 = vrot.slane %v728_v9, %v768_v11  ;;  %v776_v18 = vrot.slane %v729_v12, %v775_v13  ;;  %v783_v29 = vrot.slane %v730_v20, %v782_v22 }
 0x275   :  { %v1304_v3 = vpop.xlane.xlu0 %700  ;;  %v790_v32 = vrot.slane %v731_v24, %v789_v26  ;;  %v797_v42 = vrot.slane %v732_v30, %v796_v34  ;;  %v804_v47 = vrot.slane %v733_v37, %v803_v35  ;;  %v811_v28 = vrot.slane %v734_v46, %v810_v45 }
 0x276   :  { %v771_v21 = vsel %vm770_vm2, %v769_v15, %v764_v14  ;;  %v835_v55 = vadd.s32 4294967208, %v1302_v1  ;;  %v842_v57 = vadd.s32 4294967200, %v1302_v1  ;;  %v849_v60 = vadd.s32 4294967192, %v1302_v1 }
 0x277   :  { %v778_v25 = vsel %vm777_vm3, %v776_v18, %v771_v21  ;;  %v737_v62 = vadd.f32 %v1306_v4, %v1304_v3  ;;  %v856_v63 = vadd.s32 4294967184, %v1302_v1  ;;  %v866_v15 = vsub.s32 %v863_v41, %v1299_v0 }
 0x278   :  { %v785_v33 = vsel %vm784_vm4, %v783_v29, %v778_v25  ;;  %v838_v2 = vsub.s32 %v835_v55, %v1299_v0  ;;  %v845_v6 = vsub.s32 %v842_v57, %v1299_v0  ;;  %v852_v11 = vsub.s32 %v849_v60, %v1299_v0 }
 0x279   :  { %v695_v7 = vpop.xlane.xlu0 %694  ;;  %v792_v38 = vsel %vm791_vm5, %v790_v32, %v785_v33  ;;  %v832_v13 = vrot.slane %v737_v62, %v831_v61  ;;  %v859_v1 = vsub.s32 %v856_v63, %v1299_v0 }
 0x27a   :  { %v799_v44 = vsel %vm798_vm6, %v797_v42, %v792_v38  ;;  %v735_v49 = vadd.f32 %v1306_v4, %v695_v7 }
 0x27b   :  { %v806_v52 = vsel %vm805_vm7, %v804_v47, %v799_v44 }
 0x27c   :  { %v818_v56 = vrot.slane %v735_v49, %v817_v48  ;;  %v813_v58 = vsel %vm812_vm8, %v811_v28, %v806_v52 }
 0x27d   :  { %v698_v17 = vpop.xlane.xlu0 %697 }
 0x27e   :  { %v736_v51 = vadd.f32 %v1306_v4, %v698_v17  ;;  %v820_v5 = vsel %vm819_vm9, %v818_v56, %v813_v58 }
 0x280   :  { %v825_v59 = vrot.slane %v736_v51, %v824_v50 }
 0x281   :  { %v713_v27 = vpop.xlane.xlu0 %712 }
 0x282   :  { %v827_v10 = vsel %vm826_vm10, %v825_v59, %v820_v5  ;;  %v741_v14 = vadd.f32 %v1306_v4, %v713_v27 }
 0x283   :  { %v834_v19 = vsel %vm833_vm11, %v832_v13, %v827_v10 }
 0x284   :  { %v860_v22 = vrot.slane %v741_v14, %v859_v1 }
 0x285   :  { %v707_v40 = vpop.xlane.xlu0 %706 }
 0x286   :  { %v739_v7 = vadd.f32 %v1306_v4, %v707_v40 }
 0x288   :  { %v846_v18 = vrot.slane %v739_v7, %v845_v6 }
 0x289   :  { %v710_v54 = vpop.xlane.xlu0 %709 }
 0x28a   :  { %v740_v3 = vadd.f32 %v1306_v4, %v710_v54 }
 0x28c   :  { %v853_v20 = vrot.slane %v740_v3, %v852_v11 }
 0x28d   :  { %v716_v8 = vpop.xlane.xlu0 %715 }
 0x28e   :  { %v742_v16 = vadd.f32 %v1306_v4, %v716_v8 }
 0x290   :  { %v867_v24 = vrot.slane %v742_v16, %v866_v15 }
 0x2a0   :  { %v704_v9 = vpop.xlane.xlu1 %703 }
 0x2a1   :  { %v738_v12 = vadd.f32 %v1306_v4, %v704_v9 }
 0x2a3   :  { %v839_v17 = vrot.slane %v738_v12, %v838_v2 }
 0x2a5   :  { %v841_v21 = vsel %vm840_vm12, %v839_v17, %v834_v19 }
 0x2a6   :  { %v848_v23 = vsel %vm847_vm13, %v846_v18, %v841_v21 }
 0x2a7   :  { %v855_v25 = vsel %vm854_vm14, %v853_v20, %v848_v23 }
 0x2a8   :  { %v862_v26 = vsel %vm861_vm15, %v860_v22, %v855_v25 }
 0x2a9   :  { %v869_v27 = vsel %vm868_vm0, %v867_v24, %v862_v26 }
 0x2aa   :  { %871 = vst [vmem:[%s1370_s9] sm:$0x1] %v869_v27 }

</bundles_post_ra>
